<compile_context>
chip_gen: v7x
topology: tpu7x:2x2x1
jax: 0.10.0
libtpu: 0.0.40
codegen_flags: <defaults>
</compile_context>

<pallas_src>
import jax
import jax.numpy as jnp
from jax.experimental import pallas as pl
from jax.experimental.pallas import tpu as pltpu


# ----------------------------- Pallas kernel ------------------------------ #
def _sigmoid_last_kernel(x_ref, o_ref):
    """o = sigmoid(float(int(x))) on one sublane+lane dense tile."""
    x = x_ref[...]                                   # (rows, 128), input dtype
    # torch .long() truncates toward zero; int32 cast matches for token-id
    # ranges.  TODO(synk): int64 truncation not native on TPU (int32 here).
    o_ref[...] = jax.nn.sigmoid(x.astype(jnp.int32).astype(jnp.float32))


def lstm_forward(x, hidden, *, min_pallas_batch=1024):
    """Mirrors LSTM.forward(x, hidden) of the PyTorch module."""
    B, S = x.shape

    # Wrapper-side slice in the ORIGINAL dtype: only the last sequence step
    # ever reaches the cast chain / kernel.
    col = x[:, S - 1]                                          # (B,), x.dtype

    # Tiny batches are launch-overhead bound: a fused XLA sigmoid is cheaper
    # than a custom call.
    if B < min_pallas_batch:
        out = jax.nn.sigmoid(col.astype(jnp.int32).astype(jnp.float32))
        return out, hidden

    # Lane-dense 2D slab: pad only the sliced column up to a multiple of 128
    # lanes (<= 127 elements), then view it as (R, 128).
    Bp = pl.cdiv(B, 128) * 128
    if Bp != B:
        col = jnp.pad(col, (0, Bp - B))
    R = Bp // 128
    slab = col.reshape(R, 128)

    # Tile selection:
    #   - single full block for small/medium slabs (<= 512 KiB),
    #   - otherwise up to (4096, 128) f32 = 2 MiB blocks, with an even number
    #     of grid steps so v7x's 2 TensorCores can both be used.
    MAX_BLOCK_ROWS = 4096      # 2 MiB f32 block; 4x tile (in+out, dbl-buf) ~ 8 MiB
    SINGLE_BLOCK_ROWS = 1024   # <= 512 KiB -> one block, no split
    if R <= SINGLE_BLOCK_ROWS:
        block_rows = R                       # equals full dim -> always legal
    else:
        n = max(2, pl.cdiv(R, MAX_BLOCK_ROWS))
        n += n % 2                           # even step count for v7x megacore
        block_rows = min(MAX_BLOCK_ROWS, pl.cdiv(pl.cdiv(R, n), 8) * 8)
    grid = pl.cdiv(R, block_rows)            # partial last block is masked

    out2d = pl.pallas_call(
        _sigmoid_last_kernel,
        out_shape=jax.ShapeDtypeStruct((R, 128), jnp.float32),
        grid=(grid,),
        in_specs=[pl.BlockSpec((block_rows, 128), lambda i: (i, 0))],
        out_specs=pl.BlockSpec((block_rows, 128), lambda i: (i, 0)),
        compiler_params=pltpu.CompilerParams(
            dimension_semantics=("parallel",)),
    )(slab)

    out = out2d.reshape(Bp)
    if Bp != B:
        out = out[:B]                        # drop pad lanes (sigmoid(0)=0.5 tail)
    return out, hidden                       # (B,), hidden untouched


# ----------------------- parameter / hidden-state setup -------------------- #
def init_params(key, input_dim, output_dim, hidden_dim, embedding_dim):
    # Parameters matching the module's declared layers.  They are NOT used by
    # forward(), exactly as in the PyTorch code -- kept only for shape fidelity.
    k1, k2, _ = jax.random.split(key, 3)
    return {
        "embedding": jax.random.normal(k1, (input_dim, embedding_dim), jnp.float32),
        "fc_w": jax.random.normal(k2, (output_dim, hidden_dim), jnp.float32) * 0.02,
        "fc_b": jnp.zeros((output_dim,), jnp.float32),
    }


def init_hidden(n_layers, batch_size, hidden_dim):
    h0 = jnp.zeros((n_layers, batch_size, hidden_dim), jnp.float32)
    c0 = jnp.zeros((n_layers, batch_size, hidden_dim), jnp.float32)
    return (h0, c0)


# ---------------------------------- main ----------------------------------- #
if __name__ == "__main__":
    input_dim = 64        # vocab size
    output_dim = 1
    hidden_dim = 32
    embedding_dim = 16
    n_layers = 2
    seq = 8

    key = jax.random.PRNGKey(0)
    k1, k2, k3, kp = jax.random.split(key, 4)

    _ = init_params(kp, input_dim, output_dim, hidden_dim, embedding_dim)

    def check(x, hidden, **kw):
        out, hidden_out = lstm_forward(x, hidden, **kw)
        out = jax.block_until_ready(out)
        jax.block_until_ready(hidden_out)
        ref = jax.nn.sigmoid(x.astype(jnp.int32).astype(jnp.float32))[:, -1]
        assert out.shape == (x.shape[0],)
        assert jnp.allclose(out, ref, atol=1e-6)
        assert all(jnp.allclose(a, b) for a, b in zip(hidden, hidden_out))

    # Small batch, Pallas path forced (exercises B < 128 pad + single block).
    x_small = jax.random.randint(k1, (2, seq), 0, input_dim).astype(jnp.float32)
    check(x_small, init_hidden(n_layers, 2, hidden_dim), min_pallas_batch=1)

    # Non-multiple-of-128 batch, Pallas path forced (pad + slice-off tail).
    x_mid = jax.random.randint(k2, (300, seq), 0, input_dim).astype(jnp.float32)
    check(x_mid, init_hidden(n_layers, 300, hidden_dim), min_pallas_batch=1)

    # Small batch through the default pure-XLA fallback path.
    x_fb = jax.random.randint(k3, (2, seq), 0, input_dim).astype(jnp.float32)
    check(x_fb, init_hidden(n_layers, 2, hidden_dim))

    print("KERNEL_OK")
</pallas_src>

<mosaic_0001>
module attributes {stable_mosaic.version = 11 : i64} {
  func.func @_sigmoid_last_kernel(%arg0: i32, %arg1: memref<1x128xf32, #tpu.memory_space<vmem>>, %arg2: memref<1x128xf32, #tpu.memory_space<vmem>>) attributes {dimension_semantics = [#tpu.dimension_semantics<parallel>], iteration_bounds = array<i64: 1>, scalar_prefetch = 0 : i64, scratch_operands = 0 : i64, tpu.core_type = #tpu.core_type<tc>, window_params = [{transform_indices = @transform_0, window_bounds = array<i64: 1, 128>}, {transform_indices = @transform_1, window_bounds = array<i64: 1, 128>}]} {
    %c0 = arith.constant 0 : index
    %c0_0 = arith.constant 0 : index
    %0 = vector.load %arg1[%c0, %c0_0] : memref<1x128xf32, #tpu.memory_space<vmem>>, vector<1x128xf32>
    %1 = arith.fptosi %0 : vector<1x128xf32> to vector<1x128xi32>
    %2 = arith.sitofp %1 : vector<1x128xi32> to vector<1x128xf32>
    %3 = arith.negf %2 : vector<1x128xf32>
    %4 = math.exp %3 : vector<1x128xf32>
    %cst = arith.constant 1.000000e+00 : f32
    %5 = vector.broadcast %cst : f32 to vector<1x128xf32>
    %6 = arith.addf %5, %4 : vector<1x128xf32>
    %7 = arith.divf %5, %6 : vector<1x128xf32>
    %c0_1 = arith.constant 0 : index
    %c0_2 = arith.constant 0 : index
    %8 = vector.load %arg2[%c0_1, %c0_2] : memref<1x128xf32, #tpu.memory_space<vmem>>, vector<1x128xf32>
    tpu.vector_store %arg2[%c0_1, %c0_2], %7 {strides = array<i32>} : memref<1x128xf32, #tpu.memory_space<vmem>>, vector<1x128xf32>,
    return
  }
  func.func @transform_0(%arg0: i32) -> (i32, i32) {
    %c0_i32 = arith.constant 0 : i32
    %c0_i32_0 = arith.constant 0 : i32
    return %arg0, %c0_i32 : i32, i32
  }
  func.func @transform_1(%arg0: i32) -> (i32, i32) {
    %c0_i32 = arith.constant 0 : i32
    %c0_i32_0 = arith.constant 0 : i32
    return %arg0, %c0_i32 : i32, i32
  }
}

</mosaic_0001>

<bundles_post_ra>
// kernel: tpu_custom_call.1
= control target key start
LH: loop header
LB: loop body
LE: loop exit
PB: predicated region body
PF: predicated region fallthrough
CT: control target
= control target key end

     0   :  { %6 = vsyncpa [#allocation3], 0  ;;  %s139_s0 = inlined_call_operand.hbm [shape: f32[1,128], index: 0, kind: input, shape index: {}]   ;;  %s140_s1 = inlined_call_operand.hbm [shape: f32[1,128], index: 1, kind: output, shape index: {}]  }
   0x1   :  { %7 = vsyncpa [#allocation4], 0  ;;  %s103_s6 = smov [#allocation2]   ;;  %s55_s10 = scalar_lea.hbm %s139_s0, 16 }
   0x2   :  { %s14_s7 = sshll.u32 %s103_s6, 4  ;;  %p56_p0 = scmp.ne.s32.totalorder %s139_s0, %s55_s10  ;;  %s15_s7 = int_to_ptr.vmem [resolvable:$true] %s14_s7 }
   0x3   :  { %p59_p1 = scmp.lt.u32.totalorder %s55_s10, %s139_s0 }
   0x5   :  { %p61_p2 = pnand %p59_p1, %p56_p0 }
   0x7   :  { %64 = shalt.err (!%p61_p2)
}
   0x8   :  { %s65_s15 = scalar_lea.vmem %s15_s7, 16  ;;  %s69_s16 = scalar_lea.vmem %s15_s7, 32 }
   0x9   :  { %p66_p3 = scmp.ne.s32.totalorder %s15_s7, %s65_s15  ;;  %p70_p4 = scmp.lt.s32.totalorder %s15_s7, %s15_s7 }
   0xa   :  { %p71_p5 = scmp.lt.s32.totalorder %s69_s16, %s65_s15 }
   0xc   :  { %p72_p6 = por %p71_p5, %p70_p4 }
   0xe   :  { %p73_p7 = pnand %p72_p6, %p66_p3 }
  0x10   :  { %76 = shalt.err (!%p73_p7)
}
  0x11   :  { %17 = dma.hbm_to_vmem [thread:$0]  %s139_s0, 16, %s15_s7, [#allocation3]  }
  0x12   :  { %99 = dma.done.wait [#allocation3], 16  }
  0x13   :  { %100 = vsyncadd [#allocation3], 4294967280  ;;  %v21_v0 = vld [vmem:[#allocation2] sm:$0x1]  ;;  %s104_s19 = smov [#allocation5]  }
  0x14   :  { %v47_v1 = vtrunc.f32 %v21_v0  ;;  %s37_s20 = sshll.u32 %s104_s19, 4  ;;  %s38_s20 = int_to_ptr.vmem [resolvable:$true] %s37_s20 }
  0x15   :  { %s77_s21 = scalar_lea.vmem %s38_s20, 16  ;;  %s81_s22 = scalar_lea.vmem %s38_s20, 32 }
  0x16   :  { %v48_v2 = vcvt.f32.s32 %v47_v1  ;;  %p78_p8 = scmp.ne.s32.totalorder %s38_s20, %s77_s21  ;;  %p82_p9 = scmp.lt.s32.totalorder %s38_s20, %s38_s20 }
  0x17   :  { %p83_p10 = scmp.lt.s32.totalorder %s81_s22, %s77_s21 }
  0x18   :  { %v23_v3 = vcvt.s32.f32 %v48_v2 }
  0x19   :  { %p84_p11 = por %p83_p10, %p82_p9 }
  0x1a   :  { %v46_v4 = vmul.f32 -1.442695, %v23_v3 }
  0x1b   :  { %p85_p12 = pnand %p84_p11, %p78_p8 }
  0x1c   :  { %51 = vpow2.f32 %v46_v4 }
  0x26   :  { %v52_v5 = vpop.eup %51 }
  0x27   :  { %v27_v6 = vadd.f32 1.0, %v52_v5 }
  0x29   :  { %53 = vrcp.f32 %v27_v6 }
  0x33   :  { %v54_v7 = vpop.eup %53 }
  0x34   :  { %30 = vst [vmem:[#allocation5] sm:$0x1] %v54_v7 }
  0x35   :  { %88 = shalt.err (!%p85_p12)
}
  0x36   :  { %s89_s24 = scalar_lea.hbm %s140_s1, 16 }
  0x37   :  { %p90_p13 = scmp.ne.s32.totalorder %s140_s1, %s89_s24  ;;  %p93_p0 = scmp.lt.u32.totalorder %s89_s24, %s140_s1 }
  0x39   :  { %p95_p1 = pnand %p93_p0, %p90_p13 }
  0x3b   :  { %98 = shalt.err (!%p95_p1)
}
  0x3c   :  { %40 = dma.vmem_to_hbm [thread:$0]  %s38_s20, 16, %s140_s1, [#allocation4]  }
  0x3d   :  { %101 = dma.done.wait [#allocation4], 16  }
  0x3e   :  { %102 = vsyncadd [#allocation4], 4294967280 }
  0x3f   :  { %44 = vsyncpa [#allocation3], 1 }
  0x40   :  { %45 = vsyncpa [#allocation4], 1 }

</bundles_post_ra>
